<compile_context>
chip_gen: v6e
topology: v6e:2x2x1
jax: 0.10.0
libtpu: 0.0.40
codegen_flags: <defaults>
</compile_context>

<pallas_src>
import math

import jax
import jax.numpy as jnp
from jax.experimental import pallas as pl
from jax.experimental.pallas import tpu as pltpu


# ---------------------------------------------------------------------------
# Kernels
# ---------------------------------------------------------------------------
def _xw_kernel(x_ref, w_ref, s_ref):
    # S[row tile] = x[row tile] @ W   (bf16 operands, f32 accumulation on MXU)
    s_ref[...] = jnp.dot(
        x_ref[...], w_ref[...], preferred_element_type=jnp.float32
    ).astype(s_ref.dtype)


def _adj_spmm_relu_kernel(adj_ref, s_ref, out_ref, acc_ref):
    # out[row tile] = relu( sum_k adj[row tile, k tile] @ S[k tile] )
    k = pl.program_id(1)

    @pl.when(k == 0)
    def _():
        acc_ref[...] = jnp.zeros_like(acc_ref)

    acc_ref[...] += jnp.dot(
        adj_ref[...], s_ref[...], preferred_element_type=jnp.float32
    )

    @pl.when(k == pl.num_programs(1) - 1)
    def _():
        out_ref[...] = jnp.maximum(acc_ref[...], 0.0).astype(out_ref.dtype)


# ---------------------------------------------------------------------------
# Wrapper utilities
# ---------------------------------------------------------------------------
def _round_up(n, m):
    return ((n + m - 1) // m) * m


def _pad2(a, rows, cols):
    return jnp.pad(a, ((0, rows - a.shape[0]), (0, cols - a.shape[1])))


def _choose_node_tiling(n, *, max_tile=1024, max_overhead=1.25):
    """Pick (n_pad, tm, tk) for the node dimension.

    Pick the tile first and pad N up to a multiple of it (bounded overhead),
    rather than shrinking the tile to whatever divides N.  tm (adj row tile)
    is then capped so the row grid axis has >= 2 steps when possible, so both
    TensorCores get work on v7x.  tk (adj reduction tile) stays at the large
    tile size.
    """
    n128 = _round_up(max(n, 1), 128)
    tile, n_pad = 128, n128
    for t in range(min(max_tile, n128), 127, -128):
        padded = _round_up(n128, t)
        if padded <= max_overhead * n128:
            tile, n_pad = t, padded
            break
    tk = tile
    tm = tile
    if n_pad // tm < 2:
        for t in range(tm - 128, 127, -128):
            if n_pad % t == 0:  # any proper divisor gives grid[0] >= 2
                tm = t
                break
    return n_pad, tm, tk


_VMEM_LIMIT = 48 * 1024 * 1024


def _xw(x_p, w_p, tm):
    """S = x_p @ w_p (bf16 out), tiled over rows of x; W stays resident."""
    n_pad, f_in = x_p.shape
    f_out = w_p.shape[1]
    grid = (n_pad // tm,)

    return pl.pallas_call(
        _xw_kernel,
        out_shape=jax.ShapeDtypeStruct((n_pad, f_out), jnp.bfloat16),
        grid_spec=pltpu.PrefetchScalarGridSpec(
            num_scalar_prefetch=0,
            grid=grid,
            in_specs=[
                pl.BlockSpec((tm, f_in), lambda i: (i, 0)),       # x row tile
                pl.BlockSpec((f_in, f_out), lambda i: (0, 0)),    # W (resident)
            ],
            out_specs=pl.BlockSpec((tm, f_out), lambda i: (i, 0)),
        ),
        compiler_params=pltpu.CompilerParams(
            dimension_semantics=("parallel",),
            vmem_limit_bytes=_VMEM_LIMIT,
        ),
        cost_estimate=pl.CostEstimate(
            flops=2 * n_pad * f_in * f_out,
            transcendentals=0,
            bytes_accessed=int(x_p.size * 2 + w_p.size * 2 + n_pad * f_out * 2),
        ),
    )(x_p, w_p)


def _adj_spmm_relu(adj_p, s_p, out_dtype, tm, tk):
    """relu(adj_p @ s_p), tiled over (row tile, K tile) with f32 accumulator."""
    n_pad = adj_p.shape[0]
    f_out = s_p.shape[1]
    grid = (n_pad // tm, n_pad // tk)

    return pl.pallas_call(
        _adj_spmm_relu_kernel,
        out_shape=jax.ShapeDtypeStruct((n_pad, f_out), out_dtype),
        grid_spec=pltpu.PrefetchScalarGridSpec(
            num_scalar_prefetch=0,
            grid=grid,
            in_specs=[
                pl.BlockSpec((tm, tk), lambda i, k: (i, k)),      # adj tile
                pl.BlockSpec((tk, f_out), lambda i, k: (k, 0)),   # S rows for K tile
            ],
            out_specs=pl.BlockSpec((tm, f_out), lambda i, k: (i, 0)),
            scratch_shapes=[pltpu.VMEM((tm, f_out), jnp.float32)],
        ),
        compiler_params=pltpu.CompilerParams(
            dimension_semantics=("parallel", "arbitrary"),
            vmem_limit_bytes=_VMEM_LIMIT,
        ),
        cost_estimate=pl.CostEstimate(
            flops=2 * n_pad * n_pad * f_out,
            transcendentals=0,
            bytes_accessed=int(
                adj_p.size * 2                       # adj streamed once (bf16)
                + grid[0] * s_p.size * 2             # S re-read per row tile
                + n_pad * f_out * jnp.dtype(out_dtype).itemsize
            ),
        ),
    )(adj_p, s_p)


def gcn_forward(x, adj, w1, w2, *, max_tile=1024):
    """Full GCN forward: relu(adj @ (relu(adj @ (x @ W1)) @ W2))."""
    N, in_dim = x.shape
    hid_dim = w1.shape[1]
    out_dim = w2.shape[1]

    n_pad, tm, tk = _choose_node_tiling(N, max_tile=max_tile)
    in_pad = _round_up(in_dim, 128)
    hid_pad = _round_up(hid_dim, 128)
    out_pad = _round_up(out_dim, 128)
    # TODO(synk): pad feature dims to 256 (full MXU width on v6e/v7x) if the
    # kernel ever becomes compute-bound (e.g. after fp8/int8 adj).

    # Pad once (zero rows/cols contribute nothing) and cast MXU operands to bf16.
    adj_p = _pad2(adj, n_pad, n_pad).astype(jnp.bfloat16)
    x_p = _pad2(x, n_pad, in_pad).astype(jnp.bfloat16)
    w1_p = _pad2(w1, in_pad, hid_pad).astype(jnp.bfloat16)
    w2_p = _pad2(w2, hid_pad, out_pad).astype(jnp.bfloat16)

    # Layer 1: S1 = x @ W1 computed once; h = relu(adj @ S1), kept bf16.
    s1 = _xw(x_p, w1_p, tm)
    h_p = _adj_spmm_relu(adj_p, s1, jnp.bfloat16, tm, tk)

    # Layer 2: S2 = h @ W2; out = relu(adj @ S2) in f32.
    s2 = _xw(h_p, w2_p, tm)
    out_p = _adj_spmm_relu(adj_p, s2, jnp.float32, tm, tk)

    return out_p[:N, :out_dim]


# ---------------------------------------------------------------------------
# Parameter init (matches GraphConvolution.reset_parameters; bias unused in fwd)
# ---------------------------------------------------------------------------
def init_gcn_params(key, in_dim, hid_dim, out_dim):
    k1, k2 = jax.random.split(key)
    stdv1 = 1.0 / math.sqrt(hid_dim)
    stdv2 = 1.0 / math.sqrt(out_dim)
    w1 = jax.random.uniform(k1, (in_dim, hid_dim), jnp.float32, -stdv1, stdv1)
    w2 = jax.random.uniform(k2, (hid_dim, out_dim), jnp.float32, -stdv2, stdv2)
    return w1, w2


def gcn_reference(x, adj, w1, w2):
    """Pure-JAX reference mirroring the kernel's bf16-in / f32-accumulate math."""
    adj_b = adj.astype(jnp.bfloat16)

    def layer(inp_b, w_b):
        s = jnp.dot(inp_b, w_b, preferred_element_type=jnp.float32)
        o = jnp.dot(adj_b, s.astype(jnp.bfloat16), preferred_element_type=jnp.float32)
        return jnp.maximum(o, 0.0)

    h = layer(x.astype(jnp.bfloat16), w1.astype(jnp.bfloat16)).astype(jnp.bfloat16)
    return layer(h, w2.astype(jnp.bfloat16))


if __name__ == "__main__":
    key = jax.random.PRNGKey(0)
    k_x, k_adj, k_p = jax.random.split(key, 3)

    N, in_dim, hid_dim, out_dim = 16, 8, 32, 16

    x = jax.random.normal(k_x, (N, in_dim), jnp.float32)
    # Symmetric, row-normalized adjacency with self loops (deterministic).
    a = (jax.random.uniform(k_adj, (N, N)) < 0.3).astype(jnp.float32)
    a = jnp.maximum(a, a.T) + jnp.eye(N, dtype=jnp.float32)
    deg = jnp.sum(a, axis=1, keepdims=True)
    adj = a / deg

    w1, w2 = init_gcn_params(k_p, in_dim, hid_dim, out_dim)

    out = jax.jit(gcn_forward)(x, adj, w1, w2)
    out = jax.block_until_ready(out)

    ref = gcn_reference(x, adj, w1, w2)
    assert out.shape == (N, out_dim)
    assert jnp.allclose(out, ref, atol=1e-2, rtol=1e-2), (
        float(jnp.max(jnp.abs(out - ref)))
    )

    print("KERNEL_OK")
</pallas_src>

<mosaic_0001>
module attributes {stable_mosaic.version = 11 : i64} {
  func.func @_adj_spmm_relu_kernel(%arg0: i32, %arg1: i32, %arg2: memref<128x128xbf16, #tpu.memory_space<vmem>>, %arg3: memref<128x128xbf16, #tpu.memory_space<vmem>>, %arg4: memref<128x128xbf16, #tpu.memory_space<vmem>>, %arg5: memref<128x128xf32, #tpu.memory_space<vmem>>) attributes {dimension_semantics = [#tpu.dimension_semantics<parallel>, #tpu.dimension_semantics<arbitrary>], iteration_bounds = array<i64: 1, 1>, scalar_prefetch = 0 : i64, scratch_operands = 1 : i64, tpu.core_type = #tpu.core_type<tc>, window_params = [{transform_indices = @transform_0, window_bounds = array<i64: 128, 128>}, {transform_indices = @transform_1, window_bounds = array<i64: 128, 128>}, {transform_indices = @transform_2, window_bounds = array<i64: 128, 128>}]} {
    %c0_i32 = arith.constant 0 : i32
    %0 = arith.cmpi eq, %arg1, %c0_i32 : i32
    %1 = arith.extui %0 : i1 to i32
    %c0_i32_0 = arith.constant 0 : i32
    %2 = arith.cmpi ne, %1, %c0_i32_0 : i32
    scf.if %2 {
      %cst_10 = arith.constant 0.000000e+00 : f32
      %12 = vector.broadcast %cst_10 : f32 to vector<128x128xf32>
      %c0_11 = arith.constant 0 : index
      %c0_12 = arith.constant 0 : index
      %13 = vector.load %arg5[%c0_11, %c0_12] : memref<128x128xf32, #tpu.memory_space<vmem>>, vector<128x128xf32>
      tpu.vector_store %arg5[%c0_11, %c0_12], %12 {strides = array<i32>} : memref<128x128xf32, #tpu.memory_space<vmem>>, vector<128x128xf32>,
    } else {
    }
    %c0 = arith.constant 0 : index
    %c0_1 = arith.constant 0 : index
    %3 = vector.load %arg5[%c0, %c0_1] : memref<128x128xf32, #tpu.memory_space<vmem>>, vector<128x128xf32>
    %c0_2 = arith.constant 0 : index
    %c0_3 = arith.constant 0 : index
    %4 = vector.load %arg2[%c0_2, %c0_3] : memref<128x128xbf16, #tpu.memory_space<vmem>>, vector<128x128xbf16>
    %c0_4 = arith.constant 0 : index
    %c0_5 = arith.constant 0 : index
    %5 = vector.load %arg3[%c0_4, %c0_5] : memref<128x128xbf16, #tpu.memory_space<vmem>>, vector<128x128xbf16>
    %cst = arith.constant dense<0.000000e+00> : vector<128x128xf32>
    %6 = tpu.matmul %4, %5, %cst {dimension_numbers = #tpu.dot_dimension_numbers<[1], [0], [0], [1], [0, 0, 1, 1], [], []>} : vector<128x128xbf16>, vector<128x128xbf16>, vector<128x128xf32> -> vector<128x128xf32>
    %7 = arith.addf %3, %6 : vector<128x128xf32>
    %c0_6 = arith.constant 0 : index
    %c0_7 = arith.constant 0 : index
    %8 = vector.load %arg5[%c0_6, %c0_7] : memref<128x128xf32, #tpu.memory_space<vmem>>, vector<128x128xf32>
    tpu.vector_store %arg5[%c0_6, %c0_7], %7 {strides = array<i32>} : memref<128x128xf32, #tpu.memory_space<vmem>>, vector<128x128xf32>,
    %c0_i32_8 = arith.constant 0 : i32
    %9 = arith.cmpi eq, %arg1, %c0_i32_8 : i32
    %10 = arith.extui %9 : i1 to i32
    %c0_i32_9 = arith.constant 0 : i32
    %11 = arith.cmpi ne, %10, %c0_i32_9 : i32
    scf.if %11 {
      %c0_10 = arith.constant 0 : index
      %c0_11 = arith.constant 0 : index
      %12 = vector.load %arg5[%c0_10, %c0_11] : memref<128x128xf32, #tpu.memory_space<vmem>>, vector<128x128xf32>
      %cst_12 = arith.constant 0.000000e+00 : f32
      %13 = vector.broadcast %cst_12 : f32 to vector<128x128xf32>
      %14 = arith.maximumf %12, %13 : vector<128x128xf32>
      %15 = arith.truncf %14 : vector<128x128xf32> to vector<128x128xbf16>
      %c0_13 = arith.constant 0 : index
      %c0_14 = arith.constant 0 : index
      %16 = vector.load %arg4[%c0_13, %c0_14] : memref<128x128xbf16, #tpu.memory_space<vmem>>, vector<128x128xbf16>
      tpu.vector_store %arg4[%c0_13, %c0_14], %15 {strides = array<i32>} : memref<128x128xbf16, #tpu.memory_space<vmem>>, vector<128x128xbf16>,
    } else {
    }
    return
  }
  func.func @transform_0(%arg0: i32, %arg1: i32) -> (i32, i32) {
    %c0_i32 = arith.constant 0 : i32
    return %arg0, %arg1 : i32, i32
  }
  func.func @transform_1(%arg0: i32, %arg1: i32) -> (i32, i32) {
    %c0_i32 = arith.constant 0 : i32
    %c0_i32_0 = arith.constant 0 : i32
    return %arg1, %c0_i32 : i32, i32
  }
  func.func @transform_2(%arg0: i32, %arg1: i32) -> (i32, i32) {
    %c0_i32 = arith.constant 0 : i32
    %c0_i32_0 = arith.constant 0 : i32
    return %arg0, %c0_i32 : i32, i32
  }
}

module attributes {stable_mosaic.version = 11 : i64} {
  func.func @_adj_spmm_relu_kernel(%arg0: i32, %arg1: i32, %arg2: memref<128x128xbf16, #tpu.memory_space<vmem>>, %arg3: memref<128x128xbf16, #tpu.memory_space<vmem>>, %arg4: memref<128x128xf32, #tpu.memory_space<vmem>>, %arg5: memref<128x128xf32, #tpu.memory_space<vmem>>) attributes {dimension_semantics = [#tpu.dimension_semantics<parallel>, #tpu.dimension_semantics<arbitrary>], iteration_bounds = array<i64: 1, 1>, scalar_prefetch = 0 : i64, scratch_operands = 1 : i64, tpu.core_type = #tpu.core_type<tc>, window_params = [{transform_indices = @transform_0, window_bounds = array<i64: 128, 128>}, {transform_indices = @transform_1, window_bounds = array<i64: 128, 128>}, {transform_indices = @transform_2, window_bounds = array<i64: 128, 128>}]} {
    %c0_i32 = arith.constant 0 : i32
    %0 = arith.cmpi eq, %arg1, %c0_i32 : i32
    %1 = arith.extui %0 : i1 to i32
    %c0_i32_0 = arith.constant 0 : i32
    %2 = arith.cmpi ne, %1, %c0_i32_0 : i32
    scf.if %2 {
      %cst_10 = arith.constant 0.000000e+00 : f32
      %12 = vector.broadcast %cst_10 : f32 to vector<128x128xf32>
      %c0_11 = arith.constant 0 : index
      %c0_12 = arith.constant 0 : index
      %13 = vector.load %arg5[%c0_11, %c0_12] : memref<128x128xf32, #tpu.memory_space<vmem>>, vector<128x128xf32>
      tpu.vector_store %arg5[%c0_11, %c0_12], %12 {strides = array<i32>} : memref<128x128xf32, #tpu.memory_space<vmem>>, vector<128x128xf32>,
    } else {
    }
    %c0 = arith.constant 0 : index
    %c0_1 = arith.constant 0 : index
    %3 = vector.load %arg5[%c0, %c0_1] : memref<128x128xf32, #tpu.memory_space<vmem>>, vector<128x128xf32>
    %c0_2 = arith.constant 0 : index
    %c0_3 = arith.constant 0 : index
    %4 = vector.load %arg2[%c0_2, %c0_3] : memref<128x128xbf16, #tpu.memory_space<vmem>>, vector<128x128xbf16>
    %c0_4 = arith.constant 0 : index
    %c0_5 = arith.constant 0 : index
    %5 = vector.load %arg3[%c0_4, %c0_5] : memref<128x128xbf16, #tpu.memory_space<vmem>>, vector<128x128xbf16>
    %cst = arith.constant dense<0.000000e+00> : vector<128x128xf32>
    %6 = tpu.matmul %4, %5, %cst {dimension_numbers = #tpu.dot_dimension_numbers<[1], [0], [0], [1], [0, 0, 1, 1], [], []>} : vector<128x128xbf16>, vector<128x128xbf16>, vector<128x128xf32> -> vector<128x128xf32>
    %7 = arith.addf %3, %6 : vector<128x128xf32>
    %c0_6 = arith.constant 0 : index
    %c0_7 = arith.constant 0 : index
    %8 = vector.load %arg5[%c0_6, %c0_7] : memref<128x128xf32, #tpu.memory_space<vmem>>, vector<128x128xf32>
    tpu.vector_store %arg5[%c0_6, %c0_7], %7 {strides = array<i32>} : memref<128x128xf32, #tpu.memory_space<vmem>>, vector<128x128xf32>,
    %c0_i32_8 = arith.constant 0 : i32
    %9 = arith.cmpi eq, %arg1, %c0_i32_8 : i32
    %10 = arith.extui %9 : i1 to i32
    %c0_i32_9 = arith.constant 0 : i32
    %11 = arith.cmpi ne, %10, %c0_i32_9 : i32
    scf.if %11 {
      %c0_10 = arith.constant 0 : index
      %c0_11 = arith.constant 0 : index
      %12 = vector.load %arg5[%c0_10, %c0_11] : memref<128x128xf32, #tpu.memory_space<vmem>>, vector<128x128xf32>
      %cst_12 = arith.constant 0.000000e+00 : f32
      %13 = vector.broadcast %cst_12 : f32 to vector<128x128xf32>
      %14 = arith.maximumf %12, %13 : vector<128x128xf32>
      %c0_13 = arith.constant 0 : index
      %c0_14 = arith.constant 0 : index
      %15 = vector.load %arg4[%c0_13, %c0_14] : memref<128x128xf32, #tpu.memory_space<vmem>>, vector<128x128xf32>
      tpu.vector_store %arg4[%c0_13, %c0_14], %14 {strides = array<i32>} : memref<128x128xf32, #tpu.memory_space<vmem>>, vector<128x128xf32>,
    } else {
    }
    return
  }
  func.func @transform_0(%arg0: i32, %arg1: i32) -> (i32, i32) {
    %c0_i32 = arith.constant 0 : i32
    return %arg0, %arg1 : i32, i32
  }
  func.func @transform_1(%arg0: i32, %arg1: i32) -> (i32, i32) {
    %c0_i32 = arith.constant 0 : i32
    %c0_i32_0 = arith.constant 0 : i32
    return %arg1, %c0_i32 : i32, i32
  }
  func.func @transform_2(%arg0: i32, %arg1: i32) -> (i32, i32) {
    %c0_i32 = arith.constant 0 : i32
    %c0_i32_0 = arith.constant 0 : i32
    return %arg0, %c0_i32 : i32, i32
  }
}

module attributes {stable_mosaic.version = 11 : i64} {
  func.func @_xw_kernel(%arg0: i32, %arg1: memref<128x128xbf16, #tpu.memory_space<vmem>>, %arg2: memref<128x128xbf16, #tpu.memory_space<vmem>>, %arg3: memref<128x128xbf16, #tpu.memory_space<vmem>>) attributes {dimension_semantics = [#tpu.dimension_semantics<parallel>], iteration_bounds = array<i64: 1>, scalar_prefetch = 0 : i64, scratch_operands = 0 : i64, tpu.core_type = #tpu.core_type<tc>, window_params = [{transform_indices = @transform_0, window_bounds = array<i64: 128, 128>}, {pipeline_mode = #tpu.pipeline_mode<synchronous>, transform_indices = @transform_1, window_bounds = array<i64: 128, 128>}, {transform_indices = @transform_2, window_bounds = array<i64: 128, 128>}]} {
    %c0 = arith.constant 0 : index
    %c0_0 = arith.constant 0 : index
    %0 = vector.load %arg1[%c0, %c0_0] : memref<128x128xbf16, #tpu.memory_space<vmem>>, vector<128x128xbf16>
    %c0_1 = arith.constant 0 : index
    %c0_2 = arith.constant 0 : index
    %1 = vector.load %arg2[%c0_1, %c0_2] : memref<128x128xbf16, #tpu.memory_space<vmem>>, vector<128x128xbf16>
    %cst = arith.constant dense<0.000000e+00> : vector<128x128xf32>
    %2 = tpu.matmul %0, %1, %cst {dimension_numbers = #tpu.dot_dimension_numbers<[1], [0], [0], [1], [0, 0, 1, 1], [], []>} : vector<128x128xbf16>, vector<128x128xbf16>, vector<128x128xf32> -> vector<128x128xf32>
    %3 = arith.truncf %2 : vector<128x128xf32> to vector<128x128xbf16>
    %c0_3 = arith.constant 0 : index
    %c0_4 = arith.constant 0 : index
    %4 = vector.load %arg3[%c0_3, %c0_4] : memref<128x128xbf16, #tpu.memory_space<vmem>>, vector<128x128xbf16>
    tpu.vector_store %arg3[%c0_3, %c0_4], %3 {strides = array<i32>} : memref<128x128xbf16, #tpu.memory_space<vmem>>, vector<128x128xbf16>,
    return
  }
  func.func @transform_0(%arg0: i32) -> (i32, i32) {
    %c0_i32 = arith.constant 0 : i32
    %c0_i32_0 = arith.constant 0 : i32
    return %arg0, %c0_i32 : i32, i32
  }
  func.func @transform_1(%arg0: i32) -> (i32, i32) {
    %c0_i32 = arith.constant 0 : i32
    %c0_i32_0 = arith.constant 0 : i32
    %c0_i32_1 = arith.constant 0 : i32
    return %c0_i32, %c0_i32_0 : i32, i32
  }
  func.func @transform_2(%arg0: i32) -> (i32, i32) {
    %c0_i32 = arith.constant 0 : i32
    %c0_i32_0 = arith.constant 0 : i32
    return %arg0, %c0_i32 : i32, i32
  }
}

</mosaic_0001>

<bundles_post_ra>
// kernel: gcn_forward.7
= control target key start
LH: loop header
LB: loop body
LE: loop exit
PB: predicated region body
PF: predicated region fallthrough
CT: control target
= control target key end

     0   :  { %s567_s1 = inlined_call_operand.vmem [shape: bf16[128,128], index: 1, kind: input, shape index: {}]   ;;  %s568_s0 = inlined_call_operand.vmem [shape: bf16[128,128], index: 0, kind: input, shape index: {}]   ;;  %s569_s2 = inlined_call_operand.vmem [shape: f32[128,128], index: 2, kind: output, shape index: {}]  }
   0x1   :  { %v440_v0 = vld [vmem:[%s567_s1 + $0x38] sm:$0xff]   ;;  %v441_v1 = vld [vmem:[%s567_s1 + $0x30] sm:$0xff]   ;;  %v442_v2 = vld [vmem:[%s567_s1 + $0x28] sm:$0xff]  }
   0x2   :  { %392 = vmatprep.subr.bf16.mxu0 %v440_v0  ;;  %424 = vmatprep.subr.bf16.mxu1 %v440_v0  ;;  %v443_v3 = vld [vmem:[%s567_s1 + $0x20] sm:$0xff]   ;;  %v444_v6 = vld [vmem:[%s567_s1 + $0x18] sm:$0xff]   ;;  %v445_v7 = vld [vmem:[%s567_s1 + $0x10] sm:$0xff]  }
   0x3   :  { %393 = vmatpush3.bf16.msra.mxu0 %v440_v0  ;;  %432 = vmatpush3.bf16.msra.mxu1 %v440_v0  ;;  %v448_v4 = vld [vmem:[%s568_s0] sm:$0xff]   ;;  %v446_v8 = vld [vmem:[%s567_s1 + $0x8] sm:$0xff]   ;;  %v452_v12 = vld [vmem:[%s568_s0 + $0x10] sm:$0xff]  }
   0x4   :  { %394 = vmatprep.subr.bf16.mxu0 %v441_v1  ;;  %425 = vmatprep.subr.bf16.mxu1 %v441_v1  ;;  %v449_v5 = vld [vmem:[%s568_s0 + $0x20] sm:$0xff]   ;;  %v450_v10 = vld [vmem:[%s568_s0 + $0x8] sm:$0xff]   ;;  %v453_v13 = vld [vmem:[%s568_s0 + $0x30] sm:$0xff]  }
   0x5   :  { %408 = vmatprep.mubr.bf16.mxu0 %v448_v4  ;;  %416 = vmatprep.mubr.bf16.mxu1 %v449_v5  ;;  %v447_v9 = vld [vmem:[%s567_s1] sm:$0xff]   ;;  %v451_v11 = vld [vmem:[%s568_s0 + $0x28] sm:$0xff]   ;;  %v454_v14 = vld [vmem:[%s568_s0 + $0x18] sm:$0xff]  }
   0x6   :  { %v455_v15 = vld [vmem:[%s568_s0 + $0x38] sm:$0xff]  }
   0x7   :  { %395 = vmatpush3.bf16.msra.mxu0 %v441_v1  ;;  %433 = vmatpush3.bf16.msra.mxu1 %v441_v1 }
   0x8   :  { %396 = vmatprep.subr.bf16.mxu0 %v442_v2  ;;  %426 = vmatprep.subr.bf16.mxu1 %v442_v2 }
   0xb   :  { %397 = vmatpush3.bf16.msra.mxu0 %v442_v2  ;;  %434 = vmatpush3.bf16.msra.mxu1 %v442_v2 }
   0xc   :  { %398 = vmatprep.subr.bf16.mxu0 %v443_v3  ;;  %427 = vmatprep.subr.bf16.mxu1 %v443_v3 }
   0xf   :  { %399 = vmatpush3.bf16.msra.mxu0 %v443_v3  ;;  %435 = vmatpush3.bf16.msra.mxu1 %v443_v3 }
  0x10   :  { %400 = vmatprep.subr.bf16.mxu0 %v444_v6  ;;  %428 = vmatprep.subr.bf16.mxu1 %v444_v6 }
  0x13   :  { %401 = vmatpush3.bf16.msra.mxu0 %v444_v6  ;;  %436 = vmatpush3.bf16.msra.mxu1 %v444_v6 }
  0x14   :  { %402 = vmatprep.subr.bf16.mxu0 %v445_v7  ;;  %429 = vmatprep.subr.bf16.mxu1 %v445_v7 }
  0x17   :  { %403 = vmatpush3.bf16.msra.mxu0 %v445_v7  ;;  %437 = vmatpush3.bf16.msra.mxu1 %v445_v7 }
  0x18   :  { %404 = vmatprep.subr.bf16.mxu0 %v446_v8  ;;  %430 = vmatprep.subr.bf16.mxu1 %v446_v8 }
  0x1b   :  { %405 = vmatpush3.bf16.msra.mxu0 %v446_v8  ;;  %438 = vmatpush3.bf16.msra.mxu1 %v446_v8 }
  0x1c   :  { %406 = vmatprep.subr.bf16.mxu0 %v447_v9  ;;  %431 = vmatprep.subr.bf16.mxu1 %v447_v9 }
  0x1f   :  { %407 = vmatpush3.bf16.msra.mxu0 %v447_v9  ;;  %439 = vmatpush3.bf16.msra.mxu1 %v447_v9 }
  0x22   :  { %409 = vmatmul.mubr.bf16.vlgmr.msra.gmra.mxu0 %v450_v10  ;;  %417 = vmatmul.mubr.bf16.vlgmr.msra.gmra.mxu1 %v451_v11 }
  0x23   :  { %412 = vmatprep.mubr.bf16.mxu0 %v452_v12  ;;  %420 = vmatprep.mubr.bf16.mxu1 %v453_v13 }
  0x2a   :  { %413 = vmatmul.mubr.bf16.gmra.mxu0 %v454_v14  ;;  %421 = vmatmul.mubr.bf16.gmra.mxu1 %v455_v15 }
  0xe2   :  { %v410_v16 = vpop.f32.mrf.mxu0  ;;  %v418_v17 = vpop.f32.mrf.mxu1 }
  0xe3   :  { %v326_v18 = vmax.f32 %v410_v16, 0.0  ;;  %v334_v19 = vmax.f32 %v418_v17, 0.0 }
  0xe4   :  { %v210_v20 = vpop.f32.mrf.mxu0  ;;  %v242_v21 = vpop.f32.mrf.mxu1 }
  0xe5   :  { %342 = vst [vmem:[%s569_s2 + $0x10] sm:$0xff] %v326_v18  ;;  %350 = vst [vmem:[%s569_s2 + $0x50] sm:$0xff] %v334_v19  ;;  %v324_v22 = vmax.f32 %v210_v20, 0.0  ;;  %v332_v23 = vmax.f32 %v242_v21, 0.0 }
  0xe6   :  { %v411_v24 = vpop.f32.mrf.mxu0  ;;  %v419_v25 = vpop.f32.mrf.mxu1 }
  0xe7   :  { %340 = vst [vmem:[%s569_s2] sm:$0xff] %v324_v22  ;;  %348 = vst [vmem:[%s569_s2 + $0x40] sm:$0xff] %v332_v23  ;;  %v327_v26 = vmax.f32 %v411_v24, 0.0  ;;  %v335_v27 = vmax.f32 %v419_v25, 0.0 }
  0xe8   :  { %v213_v28 = vpop.f32.mrf.mxu0  ;;  %v245_v29 = vpop.f32.mrf.mxu1 }
  0xe9   :  { %343 = vst [vmem:[%s569_s2 + $0x18] sm:$0xff] %v327_v26  ;;  %351 = vst [vmem:[%s569_s2 + $0x58] sm:$0xff] %v335_v27  ;;  %v325_v30 = vmax.f32 %v213_v28, 0.0  ;;  %v333_v31 = vmax.f32 %v245_v29, 0.0 }
  0xea   :  { %v414_v32 = vpop.f32.mrf.mxu0  ;;  %v422_v33 = vpop.f32.mrf.mxu1 }
  0xeb   :  { %341 = vst [vmem:[%s569_s2 + $0x8] sm:$0xff] %v325_v30  ;;  %349 = vst [vmem:[%s569_s2 + $0x48] sm:$0xff] %v333_v31  ;;  %v330_v34 = vmax.f32 %v414_v32, 0.0  ;;  %v338_v35 = vmax.f32 %v422_v33, 0.0 }
  0xec   :  { %v226_v36 = vpop.f32.mrf.mxu0  ;;  %v258_v37 = vpop.f32.mrf.mxu1 }
  0xed   :  { %346 = vst [vmem:[%s569_s2 + $0x30] sm:$0xff] %v330_v34  ;;  %354 = vst [vmem:[%s569_s2 + $0x70] sm:$0xff] %v338_v35  ;;  %v328_v38 = vmax.f32 %v226_v36, 0.0  ;;  %v336_v39 = vmax.f32 %v258_v37, 0.0 }
  0xee   :  { %v415_v40 = vpop.f32.mrf.mxu0  ;;  %v423_v41 = vpop.f32.mrf.mxu1 }
  0xef   :  { %344 = vst [vmem:[%s569_s2 + $0x20] sm:$0xff] %v328_v38  ;;  %352 = vst [vmem:[%s569_s2 + $0x60] sm:$0xff] %v336_v39  ;;  %v331_v42 = vmax.f32 %v415_v40, 0.0  ;;  %v339_v43 = vmax.f32 %v423_v41, 0.0 }
  0xf0   :  { %v229_v44 = vpop.f32.mrf.mxu0  ;;  %v261_v45 = vpop.f32.mrf.mxu1 }
  0xf1   :  { %347 = vst [vmem:[%s569_s2 + $0x38] sm:$0xff] %v331_v42  ;;  %355 = vst [vmem:[%s569_s2 + $0x78] sm:$0xff] %v339_v43  ;;  %v329_v46 = vmax.f32 %v229_v44, 0.0  ;;  %v337_v47 = vmax.f32 %v261_v45, 0.0 }
  0xf3   :  { %345 = vst [vmem:[%s569_s2 + $0x28] sm:$0xff] %v329_v46  ;;  %353 = vst [vmem:[%s569_s2 + $0x68] sm:$0xff] %v337_v47 }

// kernel: gcn_forward.5
= control target key start
LH: loop header
LB: loop body
LE: loop exit
PB: predicated region body
PF: predicated region fallthrough
CT: control target
= control target key end

     0   :  { %s686_s1 = inlined_call_operand.vmem [shape: bf16[128,128], index: 1, kind: input, shape index: {}]   ;;  %s687_s0 = inlined_call_operand.vmem [shape: bf16[128,128], index: 0, kind: input, shape index: {}]   ;;  %s688_s2 = inlined_call_operand.vmem [shape: bf16[128,128], index: 2, kind: output, shape index: {}]  }
   0x1   :  { %v583_v0 = vld [vmem:[%s686_s1 + $0x38] sm:$0xff]   ;;  %v584_v1 = vld [vmem:[%s686_s1 + $0x30] sm:$0xff]   ;;  %v585_v2 = vld [vmem:[%s686_s1 + $0x28] sm:$0xff]  }
   0x2   :  { %535 = vmatprep.subr.bf16.mxu0 %v583_v0  ;;  %567 = vmatprep.subr.bf16.mxu1 %v583_v0  ;;  %v586_v3 = vld [vmem:[%s686_s1 + $0x20] sm:$0xff]   ;;  %v587_v6 = vld [vmem:[%s686_s1 + $0x18] sm:$0xff]   ;;  %v588_v7 = vld [vmem:[%s686_s1 + $0x10] sm:$0xff]  }
   0x3   :  { %536 = vmatpush3.bf16.msra.mxu0 %v583_v0  ;;  %575 = vmatpush3.bf16.msra.mxu1 %v583_v0  ;;  %v591_v4 = vld [vmem:[%s687_s0] sm:$0xff]   ;;  %v589_v8 = vld [vmem:[%s686_s1 + $0x8] sm:$0xff]   ;;  %v595_v12 = vld [vmem:[%s687_s0 + $0x10] sm:$0xff]  }
   0x4   :  { %537 = vmatprep.subr.bf16.mxu0 %v584_v1  ;;  %568 = vmatprep.subr.bf16.mxu1 %v584_v1  ;;  %v592_v5 = vld [vmem:[%s687_s0 + $0x20] sm:$0xff]   ;;  %v593_v10 = vld [vmem:[%s687_s0 + $0x8] sm:$0xff]   ;;  %v596_v13 = vld [vmem:[%s687_s0 + $0x30] sm:$0xff]  }
   0x5   :  { %551 = vmatprep.mubr.bf16.mxu0 %v591_v4  ;;  %559 = vmatprep.mubr.bf16.mxu1 %v592_v5  ;;  %v590_v9 = vld [vmem:[%s686_s1] sm:$0xff]   ;;  %v594_v11 = vld [vmem:[%s687_s0 + $0x28] sm:$0xff]   ;;  %v597_v14 = vld [vmem:[%s687_s0 + $0x18] sm:$0xff]  }
   0x6   :  { %v598_v15 = vld [vmem:[%s687_s0 + $0x38] sm:$0xff]  }
   0x7   :  { %538 = vmatpush3.bf16.msra.mxu0 %v584_v1  ;;  %576 = vmatpush3.bf16.msra.mxu1 %v584_v1 }
   0x8   :  { %539 = vmatprep.subr.bf16.mxu0 %v585_v2  ;;  %569 = vmatprep.subr.bf16.mxu1 %v585_v2 }
   0xb   :  { %540 = vmatpush3.bf16.msra.mxu0 %v585_v2  ;;  %577 = vmatpush3.bf16.msra.mxu1 %v585_v2 }
   0xc   :  { %541 = vmatprep.subr.bf16.mxu0 %v586_v3  ;;  %570 = vmatprep.subr.bf16.mxu1 %v586_v3 }
   0xf   :  { %542 = vmatpush3.bf16.msra.mxu0 %v586_v3  ;;  %578 = vmatpush3.bf16.msra.mxu1 %v586_v3 }
  0x10   :  { %543 = vmatprep.subr.bf16.mxu0 %v587_v6  ;;  %571 = vmatprep.subr.bf16.mxu1 %v587_v6 }
  0x13   :  { %544 = vmatpush3.bf16.msra.mxu0 %v587_v6  ;;  %579 = vmatpush3.bf16.msra.mxu1 %v587_v6 }
  0x14   :  { %545 = vmatprep.subr.bf16.mxu0 %v588_v7  ;;  %572 = vmatprep.subr.bf16.mxu1 %v588_v7 }
  0x17   :  { %546 = vmatpush3.bf16.msra.mxu0 %v588_v7  ;;  %580 = vmatpush3.bf16.msra.mxu1 %v588_v7 }
  0x18   :  { %547 = vmatprep.subr.bf16.mxu0 %v589_v8  ;;  %573 = vmatprep.subr.bf16.mxu1 %v589_v8 }
  0x1b   :  { %548 = vmatpush3.bf16.msra.mxu0 %v589_v8  ;;  %581 = vmatpush3.bf16.msra.mxu1 %v589_v8 }
  0x1c   :  { %549 = vmatprep.subr.bf16.mxu0 %v590_v9  ;;  %574 = vmatprep.subr.bf16.mxu1 %v590_v9 }
  0x1f   :  { %550 = vmatpush3.bf16.msra.mxu0 %v590_v9  ;;  %582 = vmatpush3.bf16.msra.mxu1 %v590_v9 }
  0x22   :  { %552 = vmatmul.mubr.bf16.vlgmr.msra.gmra.mxu0 %v593_v10  ;;  %560 = vmatmul.mubr.bf16.vlgmr.msra.gmra.mxu1 %v594_v11 }
  0x23   :  { %555 = vmatprep.mubr.bf16.mxu0 %v595_v12  ;;  %563 = vmatprep.mubr.bf16.mxu1 %v596_v13 }
  0x2a   :  { %556 = vmatmul.mubr.bf16.gmra.mxu0 %v597_v14  ;;  %564 = vmatmul.mubr.bf16.gmra.mxu1 %v598_v15 }
  0xe2   :  { %v553_v16 = vpop.f32.mrf.mxu0  ;;  %v561_v17 = vpop.f32.mrf.mxu1 }
  0xe3   :  { %v326_v22 = vmax.f32 %v553_v16, 0.0  ;;  %v334_v23 = vmax.f32 %v561_v17, 0.0 }
  0xe4   :  { %v210_v18 = vpop.f32.mrf.mxu0  ;;  %v242_v19 = vpop.f32.mrf.mxu1 }
  0xe5   :  { %v324_v26 = vmax.f32 %v210_v18, 0.0  ;;  %v332_v27 = vmax.f32 %v242_v19, 0.0 }
  0xe6   :  { %v554_v20 = vpop.f32.mrf.mxu0  ;;  %v562_v21 = vpop.f32.mrf.mxu1 }
  0xe7   :  { %v327_v24 = vmax.f32 %v554_v20, 0.0  ;;  %v335_v25 = vmax.f32 %v562_v21, 0.0 }
  0xe8   :  { %v213_v28 = vpop.f32.mrf.mxu0  ;;  %v245_v29 = vpop.f32.mrf.mxu1 }
  0xe9   :  { %v480_v30 = vpack.c.bf16 %v327_v24, %v326_v22  ;;  %v500_v31 = vpack.c.bf16 %v335_v25, %v334_v23  ;;  %v325_v32 = vmax.f32 %v213_v28, 0.0  ;;  %v333_v33 = vmax.f32 %v245_v29, 0.0 }
  0xea   :  { %v557_v34 = vpop.f32.mrf.mxu0  ;;  %v565_v35 = vpop.f32.mrf.mxu1 }
  0xeb   :  { %512 = vst [vmem:[%s688_s2 + $0x8] sm:$0xff] %v480_v30   ;;  %516 = vst [vmem:[%s688_s2 + $0x28] sm:$0xff] %v500_v31   ;;  %v475_v36 = vpack.c.bf16 %v325_v32, %v324_v26  ;;  %v495_v37 = vpack.c.bf16 %v333_v33, %v332_v27  ;;  %v330_v42 = vmax.f32 %v557_v34, 0.0  ;;  %v338_v43 = vmax.f32 %v565_v35, 0.0 }
  0xec   :  { %v226_v38 = vpop.f32.mrf.mxu0  ;;  %v258_v39 = vpop.f32.mrf.mxu1 }
  0xed   :  { %476 = vst [vmem:[%s688_s2] sm:$0xff] %v475_v36   ;;  %515 = vst [vmem:[%s688_s2 + $0x20] sm:$0xff] %v495_v37   ;;  %v328_v46 = vmax.f32 %v226_v38, 0.0  ;;  %v336_v47 = vmax.f32 %v258_v39, 0.0 }
  0xee   :  { %v558_v40 = vpop.f32.mrf.mxu0  ;;  %v566_v41 = vpop.f32.mrf.mxu1 }
  0xef   :  { %v331_v44 = vmax.f32 %v558_v40, 0.0  ;;  %v339_v45 = vmax.f32 %v566_v41, 0.0 }
  0xf0   :  { %v229_v48 = vpop.f32.mrf.mxu0  ;;  %v261_v49 = vpop.f32.mrf.mxu1 }
  0xf1   :  { %v490_v50 = vpack.c.bf16 %v331_v44, %v330_v42  ;;  %v510_v51 = vpack.c.bf16 %v339_v45, %v338_v43  ;;  %v329_v52 = vmax.f32 %v229_v48, 0.0  ;;  %v337_v53 = vmax.f32 %v261_v49, 0.0 }
  0xf3   :  { %514 = vst [vmem:[%s688_s2 + $0x18] sm:$0xff] %v490_v50   ;;  %518 = vst [vmem:[%s688_s2 + $0x38] sm:$0xff] %v510_v51   ;;  %v485_v54 = vpack.c.bf16 %v329_v52, %v328_v46  ;;  %v505_v55 = vpack.c.bf16 %v337_v53, %v336_v47 }
  0xf5   :  { %513 = vst [vmem:[%s688_s2 + $0x10] sm:$0xff] %v485_v54   ;;  %517 = vst [vmem:[%s688_s2 + $0x30] sm:$0xff] %v505_v55  }

// kernel: gcn_forward.4
= control target key start
LH: loop header
LB: loop body
LE: loop exit
PB: predicated region body
PF: predicated region fallthrough
CT: control target
= control target key end

     0   :  { %s583_s1 = inlined_call_operand.vmem [shape: bf16[128,128], index: 1, kind: input, shape index: {}]   ;;  %s584_s0 = inlined_call_operand.vmem [shape: bf16[128,128], index: 0, kind: input, shape index: {}]   ;;  %s585_s2 = inlined_call_operand.vmem [shape: bf16[128,128], index: 2, kind: output, shape index: {}]  }
   0x1   :  { %v480_v0 = vld [vmem:[%s583_s1 + $0x38] sm:$0xff]   ;;  %v481_v1 = vld [vmem:[%s583_s1 + $0x30] sm:$0xff]   ;;  %v482_v2 = vld [vmem:[%s583_s1 + $0x28] sm:$0xff]  }
   0x2   :  { %432 = vmatprep.subr.bf16.mxu0 %v480_v0  ;;  %464 = vmatprep.subr.bf16.mxu1 %v480_v0  ;;  %v483_v3 = vld [vmem:[%s583_s1 + $0x20] sm:$0xff]   ;;  %v484_v6 = vld [vmem:[%s583_s1 + $0x18] sm:$0xff]   ;;  %v485_v7 = vld [vmem:[%s583_s1 + $0x10] sm:$0xff]  }
   0x3   :  { %433 = vmatpush3.bf16.msra.mxu0 %v480_v0  ;;  %472 = vmatpush3.bf16.msra.mxu1 %v480_v0  ;;  %v488_v4 = vld [vmem:[%s584_s0] sm:$0xff]   ;;  %v486_v8 = vld [vmem:[%s583_s1 + $0x8] sm:$0xff]   ;;  %v492_v12 = vld [vmem:[%s584_s0 + $0x10] sm:$0xff]  }
   0x4   :  { %434 = vmatprep.subr.bf16.mxu0 %v481_v1  ;;  %465 = vmatprep.subr.bf16.mxu1 %v481_v1  ;;  %v489_v5 = vld [vmem:[%s584_s0 + $0x20] sm:$0xff]   ;;  %v490_v10 = vld [vmem:[%s584_s0 + $0x8] sm:$0xff]   ;;  %v493_v13 = vld [vmem:[%s584_s0 + $0x30] sm:$0xff]  }
   0x5   :  { %448 = vmatprep.mubr.bf16.mxu0 %v488_v4  ;;  %456 = vmatprep.mubr.bf16.mxu1 %v489_v5  ;;  %v487_v9 = vld [vmem:[%s583_s1] sm:$0xff]   ;;  %v491_v11 = vld [vmem:[%s584_s0 + $0x28] sm:$0xff]   ;;  %v494_v14 = vld [vmem:[%s584_s0 + $0x18] sm:$0xff]  }
   0x6   :  { %v495_v15 = vld [vmem:[%s584_s0 + $0x38] sm:$0xff]  }
   0x7   :  { %435 = vmatpush3.bf16.msra.mxu0 %v481_v1  ;;  %473 = vmatpush3.bf16.msra.mxu1 %v481_v1 }
   0x8   :  { %436 = vmatprep.subr.bf16.mxu0 %v482_v2  ;;  %466 = vmatprep.subr.bf16.mxu1 %v482_v2 }
   0xb   :  { %437 = vmatpush3.bf16.msra.mxu0 %v482_v2  ;;  %474 = vmatpush3.bf16.msra.mxu1 %v482_v2 }
   0xc   :  { %438 = vmatprep.subr.bf16.mxu0 %v483_v3  ;;  %467 = vmatprep.subr.bf16.mxu1 %v483_v3 }
   0xf   :  { %439 = vmatpush3.bf16.msra.mxu0 %v483_v3  ;;  %475 = vmatpush3.bf16.msra.mxu1 %v483_v3 }
  0x10   :  { %440 = vmatprep.subr.bf16.mxu0 %v484_v6  ;;  %468 = vmatprep.subr.bf16.mxu1 %v484_v6 }
  0x13   :  { %441 = vmatpush3.bf16.msra.mxu0 %v484_v6  ;;  %476 = vmatpush3.bf16.msra.mxu1 %v484_v6 }
  0x14   :  { %442 = vmatprep.subr.bf16.mxu0 %v485_v7  ;;  %469 = vmatprep.subr.bf16.mxu1 %v485_v7 }
  0x17   :  { %443 = vmatpush3.bf16.msra.mxu0 %v485_v7  ;;  %477 = vmatpush3.bf16.msra.mxu1 %v485_v7 }
  0x18   :  { %444 = vmatprep.subr.bf16.mxu0 %v486_v8  ;;  %470 = vmatprep.subr.bf16.mxu1 %v486_v8 }
  0x1b   :  { %445 = vmatpush3.bf16.msra.mxu0 %v486_v8  ;;  %478 = vmatpush3.bf16.msra.mxu1 %v486_v8 }
  0x1c   :  { %446 = vmatprep.subr.bf16.mxu0 %v487_v9  ;;  %471 = vmatprep.subr.bf16.mxu1 %v487_v9 }
  0x1f   :  { %447 = vmatpush3.bf16.msra.mxu0 %v487_v9  ;;  %479 = vmatpush3.bf16.msra.mxu1 %v487_v9 }
  0x22   :  { %449 = vmatmul.mubr.bf16.vlgmr.msra.gmra.mxu0 %v490_v10  ;;  %457 = vmatmul.mubr.bf16.vlgmr.msra.gmra.mxu1 %v491_v11 }
  0x23   :  { %452 = vmatprep.mubr.bf16.mxu0 %v492_v12  ;;  %460 = vmatprep.mubr.bf16.mxu1 %v493_v13 }
  0x2a   :  { %453 = vmatmul.mubr.bf16.gmra.mxu0 %v494_v14  ;;  %461 = vmatmul.mubr.bf16.gmra.mxu1 %v495_v15 }
  0xe2   :  { %v450_v16 = vpop.f32.mrf.mxu0  ;;  %v458_v17 = vpop.f32.mrf.mxu1 }
  0xe4   :  { %v174_v18 = vpop.f32.mrf.mxu0  ;;  %v206_v19 = vpop.f32.mrf.mxu1 }
  0xe6   :  { %v451_v20 = vpop.f32.mrf.mxu0  ;;  %v459_v21 = vpop.f32.mrf.mxu1 }
  0xe7   :  { %v377_v22 = vpack.c.bf16 %v451_v20, %v450_v16  ;;  %v397_v23 = vpack.c.bf16 %v459_v21, %v458_v17 }
  0xe8   :  { %v177_v24 = vpop.f32.mrf.mxu0  ;;  %v209_v25 = vpop.f32.mrf.mxu1 }
  0xe9   :  { %409 = vst [vmem:[%s585_s2 + $0x8] sm:$0xff] %v377_v22   ;;  %413 = vst [vmem:[%s585_s2 + $0x28] sm:$0xff] %v397_v23   ;;  %v372_v26 = vpack.c.bf16 %v177_v24, %v174_v18  ;;  %v392_v27 = vpack.c.bf16 %v209_v25, %v206_v19 }
  0xea   :  { %v454_v28 = vpop.f32.mrf.mxu0  ;;  %v462_v29 = vpop.f32.mrf.mxu1 }
  0xeb   :  { %373 = vst [vmem:[%s585_s2] sm:$0xff] %v372_v26   ;;  %412 = vst [vmem:[%s585_s2 + $0x20] sm:$0xff] %v392_v27  }
  0xec   :  { %v190_v30 = vpop.f32.mrf.mxu0  ;;  %v222_v31 = vpop.f32.mrf.mxu1 }
  0xee   :  { %v455_v32 = vpop.f32.mrf.mxu0  ;;  %v463_v33 = vpop.f32.mrf.mxu1 }
  0xef   :  { %v387_v34 = vpack.c.bf16 %v455_v32, %v454_v28  ;;  %v407_v35 = vpack.c.bf16 %v463_v33, %v462_v29 }
  0xf0   :  { %v193_v36 = vpop.f32.mrf.mxu0  ;;  %v225_v37 = vpop.f32.mrf.mxu1 }
  0xf1   :  { %411 = vst [vmem:[%s585_s2 + $0x18] sm:$0xff] %v387_v34   ;;  %415 = vst [vmem:[%s585_s2 + $0x38] sm:$0xff] %v407_v35   ;;  %v382_v38 = vpack.c.bf16 %v193_v36, %v190_v30  ;;  %v402_v39 = vpack.c.bf16 %v225_v37, %v222_v31 }
  0xf3   :  { %410 = vst [vmem:[%s585_s2 + $0x10] sm:$0xff] %v382_v38   ;;  %414 = vst [vmem:[%s585_s2 + $0x30] sm:$0xff] %v402_v39  }

</bundles_post_ra>
